<compile_context>
chip_gen: v7x
topology: tpu7x:2x2x1
jax: 0.10.0
libtpu: 0.0.40
codegen_flags: <defaults>
</compile_context>

<pallas_src>
import jax
import jax.numpy as jnp
from jax.experimental import pallas as pl
from jax.experimental.pallas import tpu as pltpu


# --------------------------------------------------------------------------
# trace-time hardware queries (guarded so they can never break the run)
# --------------------------------------------------------------------------
def _vmem_capacity_bytes():
    try:
        info = pltpu.get_tpu_info()
        v = getattr(info, "vmem_capacity_bytes", None)
        if v:
            return int(v)
    except Exception:
        pass
    return 64 << 20  # conservative: v7x per-TensorCore physical VMEM


def _num_tensorcores():
    try:
        info = pltpu.get_tpu_info()
        for name in ("num_cores", "core_count", "num_tensorcores",
                     "tensorcores_per_chip"):
            v = getattr(info, name, None)
            if v:
                return int(v)
    except Exception:
        pass
    return 1  # v5e / v6e: one TensorCore per chip -> the grid is a serial loop


# --------------------------------------------------------------------------
# padded-footprint VMEM accounting
# --------------------------------------------------------------------------
def _round_up(x, m):
    return -(-x // m) * m


def _padded_bytes(rows, cols, itemsize=4):
    # last two dims of a VMEM tile pad to (8, 128)
    return _round_up(max(rows, 1), 8) * _round_up(max(cols, 1), 128) * itemsize


def _flat_consts_bytes(n, e):
    d = n * e
    return (_padded_bytes(d, 2 * n)      # block-diagonal [w1 | w2] projection
            + _padded_bytes(n, d)        # lane-expansion matrix
            + _padded_bytes(d, e))       # per-feature reduction matrix


def _flat_vmem_estimate(tb, n, e, in_itemsize):
    d = n * e
    blk_in = _padded_bytes(tb, d, in_itemsize)    # pipelined input block
    blk_f32 = _padded_bytes(tb, d, 4)             # in-kernel temps (a_exp, weighted)
    blk_out = _padded_bytes(tb, e, 4)
    # 2x double-buffered input + ~2 block-sized temporaries
    # + 2x double-buffered output + resident constants
    return 2 * blk_in + 2 * blk_f32 + 2 * blk_out + _flat_consts_bytes(n, e)


def _blocked_vmem_estimate(tb, n, e, in_itemsize):
    blk_in = tb * _round_up(n, 8) * _round_up(e, 128) * in_itemsize
    blk_f32 = tb * _round_up(n, 8) * _round_up(e, 128) * 4   # broadcast temporary
    blk_out = _padded_bytes(tb, e, 4)
    return 2 * blk_in + blk_f32 + 2 * blk_out + _padded_bytes(2, e)


def _pick_tb(batch, estimate_fn, vmem_budget, num_cores):
    divisors = [d for d in range(1, batch + 1) if batch % d == 0]
    fits = [d for d in divisors if estimate_fn(d) <= vmem_budget]
    if not fits:
        aligned_small = [d for d in divisors if d % 8 == 0]
        return min(aligned_small) if aligned_small else batch
    # (8,128) sublane rule on the (TB, ...) blocks: TB % 8 == 0 or TB == batch
    aligned = [d for d in fits if d % 8 == 0 or d == batch]
    pool = aligned if aligned else fits
    if num_cores >= 2:
        # keep an even, >= num_cores-step "parallel" grid so every TensorCore
        # gets an equal share (v7x)
        multi = [d for d in pool
                 if (batch // d) >= num_cores and (batch // d) % num_cores == 0]
        if multi:
            return max(multi)
    # single-TensorCore chip: the grid is a serial loop -> single largest tile
    # (fewer ~0.35us pipeline steps, full-size DMAs on the HBM roofline)
    return max(pool)


# --------------------------------------------------------------------------
# kernels
# --------------------------------------------------------------------------
def _self_attention_flat_kernel(emb_ref, wproj_ref, rexp_ref, rsum_ref, out_ref):
    """Lane-dense path: embedding block is (TB, N*E)."""
    n = rexp_ref.shape[0]                                      # static seq length
    emb = emb_ref[...]                                         # (TB, D)

    # fused projections: one lane-dense MXU matmul -> [f1 | f2]  (TB, 2N)
    f = jnp.dot(emb, wproj_ref[...], preferred_element_type=jnp.float32)
    f1 = f[:, :n]                                              # (TB, N)
    f2 = f[:, n:]                                              # (TB, N)

    # row max of the diag-masked score matrix without materializing it:
    # max_j S[i,:] = f1[i] + max_{j!=i} f2[j]; the scalar bias cancels in the
    # softmax. max_{j!=i} f2 is the global max m1 unless i is the UNIQUE
    # argmax, in which case it is the second-largest value m2.
    m1 = jnp.max(f2, axis=-1, keepdims=True)                   # (TB, 1)
    is_max = f2 >= m1                                          # (TB, N)
    n_max = jnp.sum(is_max.astype(jnp.float32), axis=-1, keepdims=True)
    m2 = jnp.max(jnp.where(is_max, -jnp.inf, f2), axis=-1, keepdims=True)
    max_other = jnp.where(is_max & (n_max < 1.5), m2, m1)      # (TB, N)
    max_row = f1 + max_other                                   # (TB, N)

    # softmax over the sequence axis
    m = jnp.max(max_row, axis=-1, keepdims=True)
    ex = jnp.exp(max_row - m)
    a = ex / jnp.sum(ex, axis=-1, keepdims=True)               # (TB, N)

    # attention-weighted sum of embeddings, all lane-dense / MXU:
    #   a_exp[b, j*E+e] = a[b, j]        (expand across features via MXU)
    #   out[b, e]       = sum_j a[b, j] * emb[b, j, e]
    a_exp = jnp.dot(a, rexp_ref[...], preferred_element_type=jnp.float32)  # (TB, D)
    weighted = a_exp * emb.astype(jnp.float32)                             # (TB, D)
    out_ref[...] = jnp.dot(weighted, rsum_ref[...],
                           preferred_element_type=jnp.float32
                           ).astype(out_ref.dtype)                          # (TB, E)


def _self_attention_blocked_kernel(emb_ref, w_ref, out_ref):
    """3-D path for E already a multiple of 128 (lane-dense without flattening)."""
    emb = emb_ref[...]                                         # (TB, N, E)
    w = w_ref[...].astype(jnp.float32)                         # (2, E)
    embf = emb.astype(jnp.float32)

    f1 = jnp.sum(embf * w[0:1, :], axis=-1)                    # (TB, N)
    f2 = jnp.sum(embf * w[1:2, :], axis=-1)                    # (TB, N)

    m1 = jnp.max(f2, axis=-1, keepdims=True)
    is_max = f2 >= m1
    n_max = jnp.sum(is_max.astype(jnp.float32), axis=-1, keepdims=True)
    m2 = jnp.max(jnp.where(is_max, -jnp.inf, f2), axis=-1, keepdims=True)
    max_other = jnp.where(is_max & (n_max < 1.5), m2, m1)
    max_row = f1 + max_other

    m = jnp.max(max_row, axis=-1, keepdims=True)
    ex = jnp.exp(max_row - m)
    a = ex / jnp.sum(ex, axis=-1, keepdims=True)               # (TB, N)

    out_ref[...] = jnp.sum(a[:, :, None] * embf, axis=1).astype(out_ref.dtype)


# --------------------------------------------------------------------------
# wrapper
# --------------------------------------------------------------------------
def self_attention(embedding, w1, w2, b=None, *, tb=None):
    """Forward pass of Self_Attention.

    `b` (scalar bias) is accepted for API parity but unused: softmax over
    dim=1 is invariant to a constant shift, so S + b and S give identical
    outputs. A bf16 `embedding` is supported (read as bf16, f32 accumulation).
    """
    B, N, E = embedding.shape
    D = N * E
    in_itemsize = jnp.dtype(embedding.dtype).itemsize

    vmem_phys = _vmem_capacity_bytes()
    # scoped limit: well above the 16/32 MiB defaults, but never near v7x's
    # 64 MiB physical VMEM; capped at 96 MiB for v5e/v6e (128 MiB physical).
    vmem_limit = int(max(32 << 20, min((vmem_phys * 3) // 4, 96 << 20)))
    budget = int(vmem_limit * 0.85)
    num_cores = _num_tensorcores()

    compiler_params = pltpu.CompilerParams(
        dimension_semantics=("parallel",),
        vmem_limit_bytes=vmem_limit,
    )

    use_flat = (E % 128 != 0) and (_flat_consts_bytes(N, E) <= budget // 4)

    if use_flat:
        if tb is None:
            tb = _pick_tb(B, lambda d: _flat_vmem_estimate(d, N, E, in_itemsize),
                          budget, num_cores)

        # constant matrices, built once in the wrapper (tiny for small E)
        w1v = w1.reshape(E).astype(jnp.float32)
        w2v = w2.reshape(E).astype(jnp.float32)
        eye_n = jnp.eye(N, dtype=jnp.float32)
        w_proj = jnp.concatenate(
            [jnp.einsum("nm,e->nem", eye_n, w1v).reshape(D, N),
             jnp.einsum("nm,e->nem", eye_n, w2v).reshape(D, N)],
            axis=1)                                                        # (D, 2N)
        r_exp = jnp.einsum("nm,e->nme", eye_n,
                           jnp.ones((E,), jnp.float32)).reshape(N, D)     # (N, D)
        r_sum = jnp.tile(jnp.eye(E, dtype=jnp.float32), (N, 1))           # (D, E)

        emb_flat = embedding.reshape(B, D)                                # free view

        out = pl.pallas_call(
            _self_attention_flat_kernel,
            out_shape=jax.ShapeDtypeStruct((B, E), jnp.float32),
            grid_spec=pltpu.PrefetchScalarGridSpec(
                num_scalar_prefetch=0,
                grid=(pl.cdiv(B, tb),),
                in_specs=[
                    pl.BlockSpec((tb, D), lambda i: (i, 0)),              # lane-dense tile
                    pl.BlockSpec(memory_space=pltpu.MemorySpace.VMEM),    # w_proj (resident)
                    pl.BlockSpec(memory_space=pltpu.MemorySpace.VMEM),    # r_exp  (resident)
                    pl.BlockSpec(memory_space=pltpu.MemorySpace.VMEM),    # r_sum  (resident)
                ],
                out_specs=pl.BlockSpec((tb, E), lambda i: (i, 0)),
            ),
            compiler_params=compiler_params,
        )(emb_flat, w_proj, r_exp, r_sum)
        return out

    # fallback: E already a multiple of 128 (lane-dense as-is) or the flat
    # constants would not fit VMEM.
    if tb is None:
        tb = _pick_tb(B, lambda d: _blocked_vmem_estimate(d, N, E, in_itemsize),
                      budget, num_cores)
    w12 = jnp.concatenate([w1, w2], axis=1).T.astype(jnp.float32)          # (2, E)
    out = pl.pallas_call(
        _self_attention_blocked_kernel,
        out_shape=jax.ShapeDtypeStruct((B, E), jnp.float32),
        grid_spec=pltpu.PrefetchScalarGridSpec(
            num_scalar_prefetch=0,
            grid=(pl.cdiv(B, tb),),
            in_specs=[
                pl.BlockSpec((tb, N, E), lambda i: (i, 0, 0)),
                pl.BlockSpec(memory_space=pltpu.MemorySpace.VMEM),
            ],
            out_specs=pl.BlockSpec((tb, E), lambda i: (i, 0)),
        ),
        compiler_params=compiler_params,
    )(embedding, w12)
    return out


def self_attention_ref(embedding, w1, w2, b):
    """Pure-JAX reference mirroring the PyTorch forward (bias included)."""
    B, N, E = embedding.shape
    f1 = embedding @ w1                                              # (B, N, 1)
    f2 = embedding @ w2                                              # (B, N, 1)
    S = f1 + jnp.transpose(f2, (0, 2, 1)) + b[0]                     # (B, N, N)
    eye = jnp.eye(N, dtype=bool)
    S = jnp.where(eye[None], -jnp.inf, S)
    max_row = jnp.max(S, axis=2, keepdims=True)                      # (B, N, 1)
    a = jax.nn.softmax(max_row, axis=1)                              # (B, N, 1)
    v_a = jnp.transpose(a, (0, 2, 1)) @ embedding                    # (B, 1, E)
    return v_a[:, 0, :]


if __name__ == "__main__":
    B, N, E = 16, 8, 32  # batch, seq_len, embed_size

    key = jax.random.PRNGKey(0)
    k_emb, k_w1, k_w2, k_b = jax.random.split(key, 4)

    # deterministic xavier_uniform-style init for (E, 1): bound = sqrt(6/(E+1))
    bound = (6.0 / (E + 1)) ** 0.5
    w1 = jax.random.uniform(k_w1, (E, 1), jnp.float32, -bound, bound)
    w2 = jax.random.uniform(k_w2, (E, 1), jnp.float32, -bound, bound)
    b = jax.random.normal(k_b, (1,), jnp.float32)

    embedding = jax.random.normal(k_emb, (B, N, E), jnp.float32)

    out = jax.block_until_ready(self_attention(embedding, w1, w2, b))

    ref = self_attention_ref(embedding, w1, w2, b)
    assert out.shape == (B, E)
    assert jnp.allclose(out, ref, atol=1e-4, rtol=1e-4), "mismatch vs reference"

    print("KERNEL_OK")
</pallas_src>

<mosaic_0001>
module attributes {stable_mosaic.version = 11 : i64} {
  func.func @_self_attention_flat_kernel(%arg0: i32, %arg1: memref<16x256xf32, #tpu.memory_space<vmem>>, %arg2: memref<256x16xf32, #tpu.memory_space<vmem>>, %arg3: memref<8x256xf32, #tpu.memory_space<vmem>>, %arg4: memref<256x32xf32, #tpu.memory_space<vmem>>, %arg5: memref<16x32xf32, #tpu.memory_space<vmem>>) attributes {dimension_semantics = [#tpu.dimension_semantics<parallel>], iteration_bounds = array<i64: 1>, scalar_prefetch = 0 : i64, scratch_operands = 0 : i64, tpu.core_type = #tpu.core_type<tc>, window_params = [{transform_indices = @transform_0, window_bounds = array<i64: 16, 256>}, {pipeline_mode = #tpu.pipeline_mode<synchronous>, transform_indices = @transform_1, window_bounds = array<i64: 256, 16>}, {pipeline_mode = #tpu.pipeline_mode<synchronous>, transform_indices = @transform_2, window_bounds = array<i64: 8, 256>}, {pipeline_mode = #tpu.pipeline_mode<synchronous>, transform_indices = @transform_3, window_bounds = array<i64: 256, 32>}, {transform_indices = @transform_4, window_bounds = array<i64: 16, 32>}]} {
    %c0 = arith.constant 0 : index
    %c0_0 = arith.constant 0 : index
    %0 = vector.load %arg1[%c0, %c0_0] : memref<16x256xf32, #tpu.memory_space<vmem>>, vector<16x256xf32>
    %c0_1 = arith.constant 0 : index
    %c0_2 = arith.constant 0 : index
    %1 = vector.load %arg2[%c0_1, %c0_2] : memref<256x16xf32, #tpu.memory_space<vmem>>, vector<256x16xf32>
    %cst = arith.constant dense<0.000000e+00> : vector<16x16xf32>
    %2 = tpu.matmul %0, %1, %cst {dimension_numbers = #tpu.dot_dimension_numbers<[1], [0], [0], [1], [0, 0, 1, 1], [], []>} : vector<16x256xf32>, vector<256x16xf32>, vector<16x16xf32> -> vector<16x16xf32>
    %3 = vector.extract_strided_slice %2 {offsets = [0, 0], sizes = [16, 8], strides = [1, 1]} : vector<16x16xf32> to vector<16x8xf32>
    %4 = vector.extract_strided_slice %2 {offsets = [0, 8], sizes = [16, 8], strides = [1, 1]} : vector<16x16xf32> to vector<16x8xf32>
    %cst_3 = arith.constant dense<0xFF800000> : vector<16xf32>
    %5 = vector.multi_reduction <maximumf>, %4, %cst_3 [1] : vector<16x8xf32> to vector<16xf32>
    %6 = vector.shape_cast %5 : vector<16xf32> to vector<16x1xf32>
    %7 = vector.broadcast %6 : vector<16x1xf32> to vector<16x8xf32>
    %8 = arith.cmpf oge, %4, %7 : vector<16x8xf32>
    %9 = arith.extui %8 : vector<16x8xi1> to vector<16x8xi32>
    %10 = arith.sitofp %9 : vector<16x8xi32> to vector<16x8xf32>
    %cst_4 = arith.constant dense<0.000000e+00> : vector<16xf32>
    %11 = vector.multi_reduction <add>, %10, %cst_4 [1] : vector<16x8xf32> to vector<16xf32>
    %12 = vector.shape_cast %11 : vector<16xf32> to vector<16x1xf32>
    %cst_5 = arith.constant 0xFF800000 : f32
    %13 = vector.broadcast %cst_5 : f32 to vector<16x8xf32>
    %14 = arith.select %8, %13, %4 : vector<16x8xi1>, vector<16x8xf32>
    %cst_6 = arith.constant dense<0xFF800000> : vector<16xf32>
    %15 = vector.multi_reduction <maximumf>, %14, %cst_6 [1] : vector<16x8xf32> to vector<16xf32>
    %16 = vector.shape_cast %15 : vector<16xf32> to vector<16x1xf32>
    %cst_7 = arith.constant 1.500000e+00 : f32
    %17 = vector.broadcast %cst_7 : f32 to vector<16x1xf32>
    %18 = arith.cmpf olt, %12, %17 : vector<16x1xf32>
    %19 = vector.broadcast %18 : vector<16x1xi1> to vector<16x8xi1>
    %20 = arith.andi %8, %19 : vector<16x8xi1>
    %21 = vector.shape_cast %16 : vector<16x1xf32> to vector<16x1xf32>
    %22 = vector.broadcast %21 : vector<16x1xf32> to vector<16x8xf32>
    %23 = vector.shape_cast %6 : vector<16x1xf32> to vector<16x1xf32>
    %24 = vector.broadcast %23 : vector<16x1xf32> to vector<16x8xf32>
    %25 = arith.select %20, %22, %24 : vector<16x8xi1>, vector<16x8xf32>
    %26 = arith.addf %3, %25 : vector<16x8xf32>
    %cst_8 = arith.constant dense<0xFF800000> : vector<16xf32>
    %27 = vector.multi_reduction <maximumf>, %26, %cst_8 [1] : vector<16x8xf32> to vector<16xf32>
    %28 = vector.shape_cast %27 : vector<16xf32> to vector<16x1xf32>
    %29 = vector.broadcast %28 : vector<16x1xf32> to vector<16x8xf32>
    %30 = arith.subf %26, %29 : vector<16x8xf32>
    %31 = math.exp %30 : vector<16x8xf32>
    %cst_9 = arith.constant dense<0.000000e+00> : vector<16xf32>
    %32 = vector.multi_reduction <add>, %31, %cst_9 [1] : vector<16x8xf32> to vector<16xf32>
    %33 = vector.shape_cast %32 : vector<16xf32> to vector<16x1xf32>
    %34 = vector.broadcast %33 : vector<16x1xf32> to vector<16x8xf32>
    %35 = arith.divf %31, %34 : vector<16x8xf32>
    %c0_10 = arith.constant 0 : index
    %c0_11 = arith.constant 0 : index
    %36 = vector.load %arg3[%c0_10, %c0_11] : memref<8x256xf32, #tpu.memory_space<vmem>>, vector<8x256xf32>
    %cst_12 = arith.constant dense<0.000000e+00> : vector<16x256xf32>
    %37 = tpu.matmul %35, %36, %cst_12 {dimension_numbers = #tpu.dot_dimension_numbers<[1], [0], [0], [1], [0, 0, 1, 1], [], []>} : vector<16x8xf32>, vector<8x256xf32>, vector<16x256xf32> -> vector<16x256xf32>
    %38 = arith.mulf %37, %0 : vector<16x256xf32>
    %c0_13 = arith.constant 0 : index
    %c0_14 = arith.constant 0 : index
    %39 = vector.load %arg4[%c0_13, %c0_14] : memref<256x32xf32, #tpu.memory_space<vmem>>, vector<256x32xf32>
    %cst_15 = arith.constant dense<0.000000e+00> : vector<16x32xf32>
    %40 = tpu.matmul %38, %39, %cst_15 {dimension_numbers = #tpu.dot_dimension_numbers<[1], [0], [0], [1], [0, 0, 1, 1], [], []>} : vector<16x256xf32>, vector<256x32xf32>, vector<16x32xf32> -> vector<16x32xf32>
    %c0_16 = arith.constant 0 : index
    %c0_17 = arith.constant 0 : index
    %41 = vector.load %arg5[%c0_16, %c0_17] : memref<16x32xf32, #tpu.memory_space<vmem>>, vector<16x32xf32>
    tpu.vector_store %arg5[%c0_16, %c0_17], %40 {strides = array<i32>} : memref<16x32xf32, #tpu.memory_space<vmem>>, vector<16x32xf32>,
    return
  }
  func.func @transform_0(%arg0: i32) -> (i32, i32) {
    %c0_i32 = arith.constant 0 : i32
    %c0_i32_0 = arith.constant 0 : i32
    return %arg0, %c0_i32 : i32, i32
  }
  func.func @transform_1(%arg0: i32) -> (i32, i32) {
    %c0_i32 = arith.constant 0 : i32
    %c0_i32_0 = arith.constant 0 : i32
    %c0_i32_1 = arith.constant 0 : i32
    return %c0_i32, %c0_i32_0 : i32, i32
  }
  func.func @transform_2(%arg0: i32) -> (i32, i32) {
    %c0_i32 = arith.constant 0 : i32
    %c0_i32_0 = arith.constant 0 : i32
    %c0_i32_1 = arith.constant 0 : i32
    return %c0_i32, %c0_i32_0 : i32, i32
  }
  func.func @transform_3(%arg0: i32) -> (i32, i32) {
    %c0_i32 = arith.constant 0 : i32
    %c0_i32_0 = arith.constant 0 : i32
    %c0_i32_1 = arith.constant 0 : i32
    return %c0_i32, %c0_i32_0 : i32, i32
  }
  func.func @transform_4(%arg0: i32) -> (i32, i32) {
    %c0_i32 = arith.constant 0 : i32
    %c0_i32_0 = arith.constant 0 : i32
    return %arg0, %c0_i32 : i32, i32
  }
}

</mosaic_0001>

<bundles_post_ra>
// kernel: tpu_custom_call.1
= control target key start
LH: loop header
LB: loop body
LE: loop exit
PB: predicated region body
PF: predicated region fallthrough
CT: control target
= control target key end

     0   :  { %s893_s0 = inlined_call_operand.vmem [shape: f32[16,256], index: 0, kind: input, shape index: {}]   ;;  %s894_s1 = inlined_call_operand.vmem [shape: f32[256,16], index: 1, kind: input, shape index: {}]   ;;  %s895_s2 = inlined_call_operand.vmem [shape: f32[8,256], index: 2, kind: input, shape index: {}]   ;;  %s896_s3 = inlined_call_operand.vmem [shape: f32[256,32], index: 3, kind: input, shape index: {}]   ;;  %s897_s4 = inlined_call_operand.hbm [shape: f32[16,32], index: 4, kind: output, shape index: {}]  }
   0x1   :  { %v38_v0 = vld [vmem:[%s894_s1 + $0x80] sm:$0xff]  ;;  %v39_v1 = vld [vmem:[%s894_s1 + $0x88] sm:$0xff]  ;;  %v40_v5 = vld [vmem:[%s894_s1 + $0x90] sm:$0xff] }
   0x2   :  { %v22_v2 = vld [vmem:[%s894_s1] sm:$0xff]  ;;  %v502_v3 = vpack.c.bf16 %v39_v1, %v38_v0  ;;  %v23_v4 = vld [vmem:[%s894_s1 + $0x8] sm:$0xff]  ;;  %v41_v6 = vld [vmem:[%s894_s1 + $0x98] sm:$0xff] }
   0x3   :  { %v504_v7 = vpack.c.bf16 %v23_v4, %v22_v2  ;;  %v506_v8 = vpack.c.bf16 %v41_v6, %v40_v5  ;;  %v24_v9 = vld [vmem:[%s894_s1 + $0x10] sm:$0xff]  ;;  %v25_v10 = vld [vmem:[%s894_s1 + $0x18] sm:$0xff]  ;;  %v42_v11 = vld [vmem:[%s894_s1 + $0xa0] sm:$0xff] }
   0x4   :  { %503 = vmatprep.subr.bf16.mxu0 %v502_v3  ;;  %v43_v12 = vld [vmem:[%s894_s1 + $0xa8] sm:$0xff]  ;;  %v508_v13 = vpack.c.bf16 %v25_v10, %v24_v9  ;;  %v26_v15 = vld [vmem:[%s894_s1 + $0x20] sm:$0xff]  ;;  %v44_v17 = vld [vmem:[%s894_s1 + $0xb0] sm:$0xff] }
   0x5   :  { %505 = vmatpush3.bf16.msra.mxu0 %v504_v7  ;;  %v510_v14 = vpack.c.bf16 %v43_v12, %v42_v11  ;;  %v27_v16 = vld [vmem:[%s894_s1 + $0x28] sm:$0xff]  ;;  %v45_v18 = vld [vmem:[%s894_s1 + $0xb8] sm:$0xff]  ;;  %v28_v21 = vld [vmem:[%s894_s1 + $0x30] sm:$0xff] }
   0x6   :  { %507 = vmatprep.subr.bf16.mxu0 %v506_v8  ;;  %v512_v19 = vpack.c.bf16 %v27_v16, %v26_v15  ;;  %v514_v20 = vpack.c.bf16 %v45_v18, %v44_v17  ;;  %v29_v22 = vld [vmem:[%s894_s1 + $0x38] sm:$0xff]  ;;  %v46_v23 = vld [vmem:[%s894_s1 + $0xc0] sm:$0xff]  ;;  %v47_v24 = vld [vmem:[%s894_s1 + $0xc8] sm:$0xff] }
   0x7   :  { %v690_v25 = vld [vmem:[%s893_s0 + $0x8] sm:$0xff]  ;;  %v516_v26 = vpack.c.bf16 %v29_v22, %v28_v21 }
   0x8   :  { %118 = vmatprep.mubr.f32.mxu0 %v690_v25 }
   0x9   :  { %509 = vmatpush3.bf16.msra.mxu0 %v508_v13 }
   0xa   :  { %511 = vmatprep.subr.bf16.mxu0 %v510_v14 }
   0xd   :  { %513 = vmatpush3.bf16.msra.mxu0 %v512_v19 }
   0xe   :  { %9 = vsyncpa [#allocation3], 0  ;;  %515 = vmatprep.subr.bf16.mxu0 %v514_v20  ;;  %v518_v27 = vpack.c.bf16 %v47_v24, %v46_v23  ;;  %v30_v28 = vld [vmem:[%s894_s1 + $0x40] sm:$0xff]  ;;  %v31_v29 = vld [vmem:[%s894_s1 + $0x48] sm:$0xff]  ;;  %vm129_vm0 = vcmask 130112   ;;  %v603_v60 = vmov 0.0  }
   0xf   :  { %v48_v30 = vld [vmem:[%s894_s1 + $0xd0] sm:$0xff]  ;;  %v49_v31 = vld [vmem:[%s894_s1 + $0xd8] sm:$0xff]  ;;  %v520_v32 = vpack.c.bf16 %v31_v29, %v30_v28  ;;  %v50_v36 = vld [vmem:[%s894_s1 + $0xe0] sm:$0xff]  ;;  %279 = vmatprep.mubr.f32.mxu1 %v603_v60  ;;  %vm150_vm3 = vcmask 64512   ;;  %vm403_vm8 = vcmask 261120  }
  0x10   :  { %v522_v33 = vpack.c.bf16 %v49_v31, %v48_v30  ;;  %v32_v34 = vld [vmem:[%s894_s1 + $0x50] sm:$0xff]  ;;  %v33_v35 = vld [vmem:[%s894_s1 + $0x58] sm:$0xff]  ;;  %v51_v37 = vld [vmem:[%s894_s1 + $0xe8] sm:$0xff] }
  0x11   :  { %517 = vmatpush3.bf16.msra.mxu0 %v516_v26  ;;  %v524_v38 = vpack.c.bf16 %v33_v35, %v32_v34  ;;  %v526_v39 = vpack.c.bf16 %v51_v37, %v50_v36  ;;  %v34_v40 = vld [vmem:[%s894_s1 + $0x60] sm:$0xff]  ;;  %v35_v41 = vld [vmem:[%s894_s1 + $0x68] sm:$0xff]  ;;  %v52_v42 = vld [vmem:[%s894_s1 + $0xf0] sm:$0xff] }
  0x12   :  { %519 = vmatprep.subr.bf16.mxu0 %v518_v27  ;;  %v53_v43 = vld [vmem:[%s894_s1 + $0xf8] sm:$0xff]  ;;  %v528_v44 = vpack.c.bf16 %v35_v41, %v34_v40  ;;  %v36_v46 = vld [vmem:[%s894_s1 + $0x70] sm:$0xff]  ;;  %v738_v49 = vld [vmem:[%s893_s0] sm:$0xff] }
  0x13   :  { %v530_v45 = vpack.c.bf16 %v53_v43, %v52_v42  ;;  %v37_v47 = vld [vmem:[%s894_s1 + $0x78] sm:$0xff]  ;;  %v750_v51 = vld [vmem:[%s893_s0 + $0x10] sm:$0xff]  ;;  %v312_v34 = vld [vmem:[%s896_s3 + $0x80] sm:$0xff] }
  0x14   :  { %v532_v48 = vpack.c.bf16 %v37_v47, %v36_v46  ;;  %v743_v50 = vld [vmem:[%s893_s0 + $0x18] sm:$0xff]  ;;  %s604_s0 = smov 120   ;;  %v313_v35 = vld [vmem:[%s896_s3 + $0x88] sm:$0xff]  ;;  %v314_v41 = vld [vmem:[%s896_s3 + $0x90] sm:$0xff] }
  0x15   :  { %521 = vmatpush3.bf16.msra.mxu0 %v520_v32  ;;  %v208_v32 = vld [vmem:[%s895_s2 + $0x8] sm:$0xff]  ;;  %v534_v36 = vpack.c.bf16 %v313_v35, %v312_v34  ;;  %v315_v42 = vld [vmem:[%s896_s3 + $0x98] sm:$0xff]  ;;  %v298_v47 = vld [vmem:[%s896_s3 + $0x10] sm:$0xff] }
  0x16   :  { %523 = vmatprep.subr.bf16.mxu0 %v522_v33  ;;  %v207_v33 = vld [vmem:[%s895_s2] sm:$0xff]  ;;  %215 = vmatprep.subr.mxu1 %v208_v32  ;;  %v297_v40 = vld [vmem:[%s896_s3 + $0x8] sm:$0xff]  ;;  %v538_v46 = vpack.c.bf16 %v315_v42, %v314_v41 }
  0x17   :  { %216 = vmatpush1.msra.mxu1 %v207_v33 }
  0x18   :  { %535 = vmatprep.subr.bf16.mxu1 %v534_v36 }
  0x19   :  { %525 = vmatpush3.bf16.msra.mxu0 %v524_v38 }
  0x1a   :  { %527 = vmatprep.subr.bf16.mxu0 %v526_v39  ;;  %v296_v39 = vld [vmem:[%s896_s3] sm:$0xff] }
  0x1d   :  { %529 = vmatpush3.bf16.msra.mxu0 %v528_v44  ;;  %v536_v44 = vpack.c.bf16 %v297_v40, %v296_v39 }
  0x1e   :  { %531 = vmatprep.subr.bf16.mxu0 %v530_v45 }
  0x21   :  { %533 = vmatpush3.bf16.msra.mxu0 %v532_v48  ;;  %v299_v48 = vld [vmem:[%s896_s3 + $0x18] sm:$0xff] }
  0x24   :  { %119 = vmatmul.mubr.f32.vlgmr.msra.gmra.mrb[0].mxu0 %v738_v49 }
  0x25   :  { %123 = vmatprep.mubr.f32.mxu0 %v743_v50 }
  0x28   :  { %124 = vmatmul.mubr.f32.gmra.mrb[2].mxu0 %v750_v51 }
  0xf7   :  { %v458_v52 = vpop.f32.mrb[0].mxu0 }
  0xf8   :  { %v459_v53 = vpop.f32.mrb[1].mxu0 }
  0xf9   :  { %v460_v54 = vadd.f32 %v459_v53, %v458_v52  ;;  %v316_v52 = vld [vmem:[%s896_s3 + $0xa0] sm:$0xff]  ;;  %v317_v53 = vld [vmem:[%s896_s3 + $0xa8] sm:$0xff] }
  0xfb   :  { %v461_v55 = vpop.f32.mrb[2].mxu0  ;;  %v130_v56 = vsel %vm129_vm0, %v460_v54, -inf }
  0xfc   :  { %v462_v57 = vpop.f32.mrb[3].mxu0  ;;  %131 = vmax.xlane.f32.xlu0 %v130_v56  ;;  %v300_v56 = vld [vmem:[%s896_s3 + $0x20] sm:$0xff] }
  0xfd   :  { %v463_v58 = vadd.f32 %v462_v57, %v461_v55  ;;  %v542_v55 = vpack.c.bf16 %v317_v53, %v316_v52  ;;  %v301_v57 = vld [vmem:[%s896_s3 + $0x28] sm:$0xff] }
  0xff   :  { %v133_v59 = vsel %vm129_vm0, %v463_v58, -inf }
 0x100   :  { %134 = vmax.xlane.f32.xlu0 %v133_v59  ;;  %v318_v59 = vld [vmem:[%s896_s3 + $0xb0] sm:$0xff] }
 0x189   :  { %v132_v61 = vpop.xlane.xlu0 %131 }
 0x18a   :  { %vm136_vm1 = vcmp.ge.f32.partialorder %v460_v54, %v132_v61 }
 0x18b   :  { %v422_v62 = vsel %vm136_vm1, 1.0, %v603_v60  ;;  %v157_v1 = vsel %vm136_vm1, -inf, %v460_v54 }
 0x18c   :  { %144 = vrot.lane.b32.xlu1 %v422_v62, %s604_s0  ;;  %v159_v2 = vsel %vm129_vm0, %v157_v1, -inf  ;;  %v544_v62 = vpack.c.bf16 %v301_v57, %v300_v56  ;;  %v303_v1 = vld [vmem:[%s896_s3 + $0x38] sm:$0xff] }
 0x18d   :  { %v135_v63 = vpop.xlane.xlu0 %134 }
 0x18e   :  { %vm137_vm2 = vcmp.ge.f32.partialorder %v463_v58, %v135_v63 }
 0x18f   :  { %v423_v0 = vsel %vm137_vm2, 1.0, %v603_v60  ;;  %v158_v7 = vsel %vm137_vm2, -inf, %v463_v58 }
 0x190   :  { %146 = vrot.lane.b32.xlu1 %v423_v0, %s604_s0  ;;  %v162_v8 = vsel %vm129_vm0, %v158_v7, -inf  ;;  %v302_v0 = vld [vmem:[%s896_s3 + $0x30] sm:$0xff]  ;;  %v305_v7 = vld [vmem:[%s896_s3 + $0x48] sm:$0xff] }
 0x1b4   :  { %160 = vmax.xlane.f32.xlu1 %v159_v2  ;;  %v320_v2 = vld [vmem:[%s896_s3 + $0xc0] sm:$0xff] }
 0x1fe   :  { %v145_v3 = vpop.permute.xlu1 %144 }
 0x1ff   :  { %v151_v4 = vsel %vm150_vm3, %v145_v3, 0.0  ;;  %v321_v3 = vld [vmem:[%s896_s3 + $0xc8] sm:$0xff] }
 0x200   :  { %152 = vadd.xlane.f32.xlu0 %v151_v4  ;;  %v548_v4 = vpack.c.bf16 %v303_v1, %v302_v0 }
 0x202   :  { %v147_v5 = vpop.permute.xlu1 %146 }
 0x203   :  { %v154_v6 = vsel %vm150_vm3, %v147_v5, 0.0  ;;  %v550_v5 = vpack.c.bf16 %v321_v3, %v320_v2 }
 0x204   :  { %155 = vadd.xlane.f32.xlu0 %v154_v6  ;;  %v304_v6 = vld [vmem:[%s896_s3 + $0x40] sm:$0xff] }
 0x208   :  { %163 = vmax.xlane.f32.xlu0 %v162_v8  ;;  %v322_v8 = vld [vmem:[%s896_s3 + $0xd0] sm:$0xff] }
 0x241   :  { %v161_v10 = vpop.xlane.xlu1 %160 }
 0x28d   :  { %v153_v9 = vpop.xlane.xlu0 %152 }
 0x28e   :  { %vm165_vm4 = vcmp.lt.f32.partialorder %v153_v9, 1.5  ;;  %v323_v9 = vld [vmem:[%s896_s3 + $0xd8] sm:$0xff] }
 0x28f   :  { %vm171_vm5 = vmand %vm136_vm1, %vm165_vm4 }
 0x290   :  { %v173_v11 = vsel %vm171_vm5, %v161_v10, %v132_v61  ;;  %v552_v10 = vpack.c.bf16 %v305_v7, %v304_v6 }
 0x291   :  { %177 = vrot.lane.b32.xlu0 %v173_v11, %s604_s0  ;;  %v156_v12 = vpop.xlane.xlu0 %155  ;;  %v554_v11 = vpack.c.bf16 %v323_v9, %v322_v8 }
 0x292   :  { %vm166_vm6 = vcmp.lt.f32.partialorder %v156_v12, 1.5  ;;  %v306_v12 = vld [vmem:[%s896_s3 + $0x50] sm:$0xff] }
 0x293   :  { %vm172_vm7 = vmand %vm137_vm2, %vm166_vm6 }
 0x295   :  { %v164_v13 = vpop.xlane.xlu0 %163 }
 0x296   :  { %v174_v14 = vsel %vm172_vm7, %v164_v13, %v135_v63  ;;  %v307_v13 = vld [vmem:[%s896_s3 + $0x58] sm:$0xff] }
 0x297   :  { %179 = vrot.lane.b32.xlu0 %v174_v14, %s604_s0  ;;  %v324_v14 = vld [vmem:[%s896_s3 + $0xe0] sm:$0xff] }
 0x303   :  { %v178_v15 = vpop.permute.xlu0 %177 }
 0x304   :  { %v183_v16 = vadd.f32 %v460_v54, %v178_v15  ;;  %v540_v54 = vpack.c.bf16 %v299_v48, %v298_v47  ;;  %v325_v15 = vld [vmem:[%s896_s3 + $0xe8] sm:$0xff] }
 0x306   :  { %v185_v17 = vsel %vm150_vm3, %v183_v16, -inf }
 0x307   :  { %186 = vmax.xlane.f32.xlu1 %v185_v17  ;;  %v558_v17 = vpack.c.bf16 %v325_v15, %v324_v14 }
 0x309   :  { %v180_v18 = vpop.permute.xlu0 %179 }
 0x30a   :  { %v184_v19 = vadd.f32 %v463_v58, %v180_v18  ;;  %v308_v18 = vld [vmem:[%s896_s3 + $0x60] sm:$0xff] }
 0x30c   :  { %v188_v20 = vsel %vm150_vm3, %v184_v19, -inf }
 0x30d   :  { %189 = vmax.xlane.f32.xlu0 %v188_v20 }
 0x394   :  { %v187_v21 = vpop.xlane.xlu1 %186 }
 0x395   :  { %v191_v22 = vsub.f32 %v183_v16, %v187_v21  ;;  %v556_v16 = vpack.c.bf16 %v307_v13, %v306_v12  ;;  %v326_v21 = vld [vmem:[%s896_s3 + $0xf0] sm:$0xff] }
 0x397   :  { %v193_v23 = vmul.f32 1.442695, %v191_v22  ;;  %v327_v22 = vld [vmem:[%s896_s3 + $0xf8] sm:$0xff] }
 0x399   :  { %571 = vpow2.f32 %v193_v23  ;;  %v562_v23 = vpack.c.bf16 %v327_v22, %v326_v21 }
 0x39a   :  { %v190_v24 = vpop.xlane.xlu0 %189 }
 0x39b   :  { %v192_v26 = vsub.f32 %v184_v19, %v190_v24  ;;  %v309_v19 = vld [vmem:[%s896_s3 + $0x68] sm:$0xff]  ;;  %v310_v24 = vld [vmem:[%s896_s3 + $0x70] sm:$0xff] }
 0x39c   :  { %v560_v20 = vpack.c.bf16 %v309_v19, %v308_v18 }
 0x39d   :  { %v195_v27 = vmul.f32 1.442695, %v192_v26  ;;  %v311_v26 = vld [vmem:[%s896_s3 + $0x78] sm:$0xff] }
 0x39f   :  { %573 = vpow2.f32 %v195_v27  ;;  %v564_v27 = vpack.c.bf16 %v311_v26, %v310_v24 }
 0x3a3   :  { %v572_v28 = vpop.eup %571 }
 0x3a4   :  { %v197_v29 = vsel %vm150_vm3, %v572_v28, 0.0 }
 0x3a5   :  { %198 = vadd.xlane.f32.xlu1 %v197_v29 }
 0x3a9   :  { %v574_v30 = vpop.eup %573 }
 0x3aa   :  { %v200_v31 = vsel %vm150_vm3, %v574_v30, 0.0 }
 0x3ab   :  { %201 = vadd.xlane.f32.xlu1 %v200_v31 }
 0x432   :  { %v199_v37 = vpop.xlane.xlu1 %198 }
 0x433   :  { %575 = vrcp.f32 %v199_v37 }
 0x438   :  { %v202_v38 = vpop.xlane.xlu1 %201 }
 0x439   :  { %577 = vrcp.f32 %v202_v38 }
 0x43d   :  { %v576_v43 = vpop.eup %575 }
 0x43e   :  { %v204_v45 = vmul.f32 %v576_v43, %v572_v28 }
 0x440   :  { %424 = vmatmul.mubr.msk.f32.vlgmr.msra.gmra.mrb[0].mxu1 %vm150_vm3, %v204_v45 }
 0x441   :  { %285 = vmatprep.mubr.f32.mxu1 %v603_v60  ;;  %537 = vmatpush3.bf16.msra.mxu1 %v536_v44  ;;  %v319_v60 = vld [vmem:[%s896_s3 + $0xb8] sm:$0xff]  ;;  %s605_s3 = smov [#allocation2]  }
 0x442   :  { %539 = vmatprep.subr.bf16.mxu1 %v538_v46  ;;  %v546_v63 = vpack.c.bf16 %v319_v60, %v318_v59  ;;  %s411_s2 = sshll.u32 %s605_s3, 4  ;;  %s412_s2 = int_to_ptr.vmem [resolvable:$true] %s411_s2 }
 0x443   :  { %v578_v58 = vpop.eup %577  ;;  %s579_s18 = scalar_lea.vmem %s412_s2, 256  ;;  %p584_p1 = scmp.lt.s32.totalorder %s412_s2, %s412_s2 }
 0x444   :  { %v206_v61 = vmul.f32 %v578_v58, %v574_v30  ;;  %p580_p0 = scmp.ne.s32.totalorder %s412_s2, %s579_s18  ;;  %p585_p2 = scmp.lt.s32.totalorder %s579_s18, %s579_s18 }
 0x445   :  { %541 = vmatpush3.bf16.msra.mxu1 %v540_v54 }
 0x446   :  { %425 = vmatmul.mubr.msk.f32.gmra.mrb[2].mxu1 %vm150_vm3, %v206_v61  ;;  %543 = vmatprep.subr.bf16.mxu1 %v542_v55  ;;  %p586_p3 = por %p585_p2, %p584_p1 }
 0x448   :  { %p587_p4 = pnand %p586_p3, %p580_p0 }
 0x449   :  { %545 = vmatpush3.bf16.msra.mxu1 %v544_v62 }
 0x44a   :  { %547 = vmatprep.subr.bf16.mxu1 %v546_v63 }
 0x44d   :  { %549 = vmatpush3.bf16.msra.mxu1 %v548_v4 }
 0x44e   :  { %551 = vmatprep.subr.bf16.mxu1 %v550_v5 }
 0x451   :  { %553 = vmatpush3.bf16.msra.mxu1 %v552_v10 }
 0x452   :  { %555 = vmatprep.subr.bf16.mxu1 %v554_v11 }
 0x455   :  { %557 = vmatpush3.bf16.msra.mxu1 %v556_v16 }
 0x456   :  { %559 = vmatprep.subr.bf16.mxu1 %v558_v17 }
 0x459   :  { %561 = vmatpush3.bf16.msra.mxu1 %v560_v20 }
 0x45a   :  { %563 = vmatprep.subr.bf16.mxu1 %v562_v23 }
 0x45d   :  { %565 = vmatpush3.bf16.msra.mxu1 %v564_v27 }
 0x513   :  { %v281_v28 = vpop.f32.mrb[0].mxu1 }
 0x514   :  { %v283_v29 = vpop.f32.mrb[1].mxu1  ;;  %v292_v31 = vmul.f32 %v281_v28, %v738_v49 }
 0x515   :  { %v293_v30 = vmul.f32 %v283_v29, %v690_v25 }
 0x517   :  { %392 = vmatprep.mubr.f32.mxu1 %v293_v30 }
 0x518   :  { %393 = vmatmul.mubr.f32.vlgmr.msra.gmra.mrb[4].mxu1 %v292_v31 }
 0x519   :  { %v287_v32 = vpop.f32.mrb[2].mxu1 }
 0x51a   :  { %v289_v33 = vpop.f32.mrb[3].mxu1  ;;  %v294_v35 = vmul.f32 %v287_v32, %v750_v51 }
 0x51b   :  { %v295_v34 = vmul.f32 %v289_v33, %v743_v50 }
 0x51d   :  { %397 = vmatprep.mubr.f32.mxu1 %v295_v34 }
 0x51e   :  { %398 = vmatmul.mubr.f32.gmra.mrb[6].mxu1 %v294_v35 }
 0x5eb   :  { %v496_v36 = vpop.f32.mrb[4].mxu1 }
 0x5ec   :  { %v497_v37 = vpop.f32.mrb[5].mxu1 }
 0x5ed   :  { %v498_v38 = vadd.f32 %v497_v37, %v496_v36 }
 0x5ef   :  { %404 = vst.msk [vmem:[#allocation2] sm:$0xff] %vm403_vm8, %v498_v38 }
 0x5f1   :  { %v499_v25 = vpop.f32.mrb[6].mxu1 }
 0x5f2   :  { %v500_v39 = vpop.f32.mrb[7].mxu1 }
 0x5f3   :  { %v501_v49 = vadd.f32 %v500_v39, %v499_v25 }
 0x5f5   :  { %405 = vst.msk [vmem:[#allocation2 + $0x8] sm:$0xff] %vm403_vm8, %v501_v49 }
 0x5f6   :  { %590 = shalt.err (!%p587_p4)
}
 0x5f7   :  { %s591_s21 = scalar_lea.hbm %s897_s4, 256 }
 0x5f8   :  { %p592_p5 = scmp.ne.s32.totalorder %s897_s4, %s591_s21  ;;  %p595_p6 = scmp.lt.u32.totalorder %s591_s21, %s897_s4 }
 0x5fa   :  { %p597_p7 = pnand %p595_p6, %p592_p5 }
 0x5fc   :  { %600 = shalt.err (!%p597_p7)
}
 0x5fd   :  { %s606_s26 = smov 128   ;;  %s607_s27 = smov 8  }
 0x5fe   :  { %417 = dma.vmem_to_hbm [thread:$0]  %s412_s2, 256, %s897_s4, [#allocation3], %s606_s26, %s606_s26, %s607_s27  }
 0x5ff   :  { %601 = dma.done.wait [#allocation3], 256  }
 0x600   :  { %602 = vsyncadd [#allocation3], 4294967040 }
 0x601   :  { %421 = vsyncpa [#allocation3], 1 }

</bundles_post_ra>
